<compile_context>
chip_gen: v7x
topology: tpu7x:2x2x1
jax: 0.10.0
libtpu: 0.0.40
codegen_flags: <defaults>
</compile_context>

<pallas_src>
import jax
import jax.numpy as jnp
from jax.experimental import pallas as pl
from jax.experimental.pallas import tpu as pltpu


# ---------------------------------------------------------------------------
# Chip / tiling policy
# ---------------------------------------------------------------------------

def _chip_config():
    """Generation-aware tiling policy (queried at trace time; cheap)."""
    kind = ""
    try:
        kind = jax.devices()[0].device_kind.lower()
    except Exception:
        pass

    if "v7" in kind:
        # 2 TensorCores / chip, 64 MiB VMEM per core, ~3.2 TB/s HBM.
        cfg = dict(dual_tc=True, vmem_limit=48 << 20, target_block_bytes=3 << 20,
                   bf16_valu=True)
    elif "v6" in kind:
        # 1 TensorCore, 128 MiB VMEM (32 MiB scoped default), ~1.4 TB/s HBM.
        cfg = dict(dual_tc=False, vmem_limit=96 << 20, target_block_bytes=6 << 20,
                   bf16_valu=True)
    elif ("v5e" in kind) or ("v5" in kind and "lite" in kind):
        # v5e: 1 TensorCore, 128 MiB VMEM (16 MiB scoped default), ~0.8 TB/s HBM.
        cfg = dict(dual_tc=False, vmem_limit=64 << 20, target_block_bytes=6 << 20,
                   bf16_valu=False)
    else:
        # Unknown generation: conservative (assume dual core, small VMEM, f32 VALU).
        cfg = dict(dual_tc=True, vmem_limit=48 << 20, target_block_bytes=4 << 20,
                   bf16_valu=False)

    try:  # Refine the VMEM limit from the actual hardware when available.
        vmem_phys = int(pltpu.get_tpu_info().vmem_capacity_bytes)
        if vmem_phys > 0:
            cfg["vmem_limit"] = min(cfg["vmem_limit"], (vmem_phys * 3) // 4)
    except Exception:
        pass
    return cfg


def _choose_batch_block(B, band_sample_bytes, tmp_sample_bytes, weight_bytes, cfg):
    """Largest batch block that fits the VMEM budget and the per-band block target.

    VMEM working set per batch row of a block:
      * input block holds the style+content band pair, double-buffered  -> 4x native
      * output block holds the content band, double-buffered            -> 2x native
      * ~2 working copies (compute dtype) are live inside the body      -> 2x compute
    """
    budget = (cfg["vmem_limit"] * 3) // 4 - weight_bytes
    per_row = 6 * band_sample_bytes + 2 * tmp_sample_bytes
    vmem_cap = max(1, budget // max(per_row, 1))
    target_cap = max(1, cfg["target_block_bytes"] // max(band_sample_bytes, 1))
    cap = max(1, min(B, vmem_cap, target_cap))
    # TODO(synk): ragged / prime B collapses toward small divisors; pad B or add a
    # masked tail block so large blocks survive awkward batch sizes.
    divisors = [d for d in range(1, cap + 1) if B % d == 0]
    if cfg["dual_tc"] and B >= 2:
        # Prefer an EVEN number of grid steps so the parallel axis splits evenly
        # across the two TensorCores; otherwise at least 2 steps.
        even = [d for d in divisors if (B // d) % 2 == 0]
        if even:
            return even[-1]
        multi = [d for d in divisors if (B // d) >= 2]
        if multi:
            return multi[-1]
    return divisors[-1] if divisors else 1


# ---------------------------------------------------------------------------
# Optional single-buffered weight operands (pl.Buffered(1)) — probed once.
# ---------------------------------------------------------------------------

_BUFFERED1_OK = None


def _copy_probe_kernel(a_ref, o_ref):
    o_ref[...] = a_ref[...]


def _single_buffer_supported():
    """Probe whether pipeline_mode=pl.Buffered(1) lowers cleanly on this build."""
    global _BUFFERED1_OK
    if _BUFFERED1_OK is None:
        try:
            spec = pl.BlockSpec((8, 128), lambda i: (0, 0), pipeline_mode=pl.Buffered(1))
            call = pl.pallas_call(
                _copy_probe_kernel,
                out_shape=jax.ShapeDtypeStruct((8, 128), jnp.float32),
                grid=(1,),
                in_specs=[spec],
                out_specs=pl.BlockSpec((8, 128), lambda i: (0, 0)),
            )
            jax.jit(call).lower(jax.ShapeDtypeStruct((8, 128), jnp.float32))
            _BUFFERED1_OK = True
        except Exception:
            _BUFFERED1_OK = False
    return _BUFFERED1_OK


# ---------------------------------------------------------------------------
# Kernel
# ---------------------------------------------------------------------------

def _make_cupi_kernel(compute_dtype, use_mxu):
    f32 = jnp.float32

    def kernel(x_ref, wm_t_ref, ws_t_ref, out_ref):
        # x_ref:   [2, Bblk, C, HW]   band 0 = style, band 1 = content
        # out_ref: [Bblk, C, HW]      content band of the output (leading dim squeezed)
        # wm_t_ref / ws_t_ref: [C_in, C_out] pre-transposed 1x1-conv weights
        hw = x_ref.shape[-1]
        inv_hw = f32(1.0 / hw)
        # Unbiased variance divides by (hw - 1); hw == 1 gives NaN like PyTorch.
        inv_hwm1 = f32(1.0 / (hw - 1)) if hw > 1 else f32(jnp.nan)

        def band_stats(band):
            # Two-pass mean / variance with f32 accumulation: robust against the
            # catastrophic cancellation of the sum / sum-of-squares formulation.
            mean = jnp.sum(band, axis=-1, dtype=f32) * inv_hw                 # [Bblk, C]
            d = band.astype(compute_dtype) - mean.astype(compute_dtype)[..., None]
            var = jnp.sum(d * d, axis=-1, dtype=f32) * inv_hwm1               # [Bblk, C]
            return mean, jnp.sqrt(var + 1e-5)

        # Style band first: its working copies die before the content band is
        # touched, halving the peak temporary pressure.
        s_mean, s_std = band_stats(x_ref[0])
        xc = x_ref[1]
        c_mean, c_std = band_stats(xc)

        # 1x1 conv, no bias: out[b, o] = sum_c w[o, c] * in[b, c].  Weights arrive
        # pre-transposed ([C_in, C_out]) so this is a plain [Bblk, C] @ [C, C] matmul.
        wm_t = wm_t_ref[...].astype(f32)
        ws_t = ws_t_ref[...].astype(f32)
        if use_mxu:
            mean_lin = jnp.dot(s_mean, wm_t, preferred_element_type=f32)
            std_lin = jnp.dot(s_std, ws_t, preferred_element_type=f32)
        else:
            # Tiny C (e.g. unit test): broadcast-reduce avoids a sub-tile matmul.
            mean_lin = jnp.sum(s_mean[:, :, None] * wm_t[None, :, :], axis=1)
            std_lin = jnp.sum(s_std[:, :, None] * ws_t[None, :, :], axis=1)
        mean = jax.nn.sigmoid(mean_lin)                                        # [Bblk, C]
        std = jax.nn.sigmoid(std_lin)                                          # [Bblk, C]

        # Fused apply: out = xc * scale + shift — a single FMA over the big tile;
        # the reciprocal is hoisted to the tiny per-channel stats.  On bf16-VALU
        # chips with bf16 inputs the FMA runs natively in bf16 (compute_dtype).
        scale = std / (c_std + 1e-6)
        shift = mean - c_mean * scale
        out_ref[...] = (xc.astype(compute_dtype) * scale.astype(compute_dtype)[..., None]
                        + shift.astype(compute_dtype)[..., None]).astype(out_ref.dtype)

    return kernel


# ---------------------------------------------------------------------------
# Wrapper
# ---------------------------------------------------------------------------

def cupi_forward(x, w_mean, w_std, training=True):
    """x: [3B, C, H, W]; w_mean / w_std: [C_out, C_in] 1x1-conv weights (squeezed)."""
    if not training:
        return x
    N, C, H, W = x.shape
    B = N // 3
    if B == 0:
        return x
    if N % 3 != 0:
        # TODO(synk): rare non-multiple-of-3 batch: process the first 3B rows with the
        # kernel and re-attach the tail (extra copy only on this path).
        head = cupi_forward(x[:3 * B], w_mean, w_std, training=True)
        return jnp.concatenate([head, x[3 * B:]], axis=0)

    HW = H * W
    x3 = x.reshape(3, B, C, HW)        # band 0: style, 1: content, 2: pass-through
    cfg = _chip_config()

    itemsize = x.dtype.itemsize
    compute_dtype = (jnp.bfloat16
                     if (x.dtype == jnp.bfloat16 and cfg["bf16_valu"])
                     else jnp.float32)
    band_sample_bytes = C * HW * itemsize
    tmp_sample_bytes = C * HW * jnp.dtype(compute_dtype).itemsize
    # Weight buffers only matter for large C; single-buffer them when supported.
    single_buf_weights = (C >= 128) and _single_buffer_supported()
    weight_bytes = (2 if single_buf_weights else 4) * C * C * 4

    bblk = _choose_batch_block(B, band_sample_bytes, tmp_sample_bytes, weight_bytes, cfg)
    n_blocks = B // bblk
    # TODO(synk): if a single-sample block (bblk == 1) still exceeds the VMEM budget
    # (very large C*HW), split into a stats pass + apply pass with inner HW tiling.
    # TODO(synk): when HW is not a multiple of 128 (e.g. 7x7 / 14x14 maps), pad or
    # re-layout so the output stores are lane-dense instead of masked.

    w_index_map = lambda b: (0, 0)
    if single_buf_weights:
        w_spec = pl.BlockSpec((C, C), w_index_map, pipeline_mode=pl.Buffered(1))
    else:
        w_spec = pl.BlockSpec((C, C), w_index_map)

    kernel = _make_cupi_kernel(compute_dtype, use_mxu=(C >= 128))

    cost = pl.CostEstimate(
        flops=int(10 * B * C * HW + 4 * B * C * C),
        transcendentals=int(2 * B * C),
        bytes_accessed=int(3 * B * C * HW * itemsize + 2 * C * C * w_mean.dtype.itemsize),
    )

    out3 = pl.pallas_call(
        kernel,
        out_shape=jax.ShapeDtypeStruct((3, B, C, HW), x.dtype),
        grid_spec=pltpu.PrefetchScalarGridSpec(
            num_scalar_prefetch=0,
            grid=(n_blocks,),
            in_specs=[
                # One operand carries BOTH the style and content bands, so the aliased
                # buffer is touched by exactly one operand (no defensive copy).
                pl.BlockSpec((2, bblk, C, HW), lambda b: (0, b, 0, 0)),
                w_spec,      # w_mean^T
                w_spec,      # w_std^T
            ],
            # Only the content band of the output is written; bands 0 and 2 pass
            # through untouched via the buffer aliasing below.
            out_specs=pl.BlockSpec((None, bblk, C, HW), lambda b: (1, b, 0, 0)),
        ),
        # Output buffer is x's buffer: x[:B] and x[2B:] pass through without any
        # extra HBM traffic (caller donates x via jit donate_argnums).
        input_output_aliases={0: 0},
        compiler_params=pltpu.CompilerParams(
            dimension_semantics=("parallel",),
            vmem_limit_bytes=int(cfg["vmem_limit"])),
        cost_estimate=cost,
    )(x3, w_mean.T, w_std.T)

    return out3.reshape(N, C, H, W)


# ---------------------------------------------------------------------------
# Pure-JAX reference + self-test
# ---------------------------------------------------------------------------

def _cupi_reference(x, w_mean, w_std):
    """Pure-JAX reference mirroring the PyTorch forward (training mode)."""
    N, C, H, W = x.shape
    B = N // 3

    def stats(t):
        flat = t.reshape(t.shape[0], C, -1)
        mean = flat.mean(axis=2)
        var = flat.var(axis=2, ddof=1) + 1e-5
        return mean[:, :, None, None], jnp.sqrt(var)[:, :, None, None]

    s_mean, s_std = stats(x[:B])
    c_mean, c_std = stats(x[B:2 * B])
    mean = jax.nn.sigmoid(jnp.einsum('oc,bcij->boij', w_mean, s_mean))
    std = jax.nn.sigmoid(jnp.einsum('oc,bcij->boij', w_std, s_std))
    x_a = (x[B:2 * B] - c_mean) / (c_std + 1e-6) * std + mean
    return jnp.concatenate([x[:B], x_a, x[2 * B:]], axis=0)


if __name__ == "__main__":
    key = jax.random.PRNGKey(0)
    kx, kwm, kws = jax.random.split(key, 3)

    B, C, H, W = 2, 8, 16, 16            # x has 3*B along the batch axis
    x = jax.random.normal(kx, (3 * B, C, H, W), dtype=jnp.float32)

    # Deterministic stand-in for nn.Conv2d(C, C, 1, bias=False) default init:
    # kaiming_uniform(a=sqrt(5)) -> U(-1/sqrt(fan_in), 1/sqrt(fan_in)), fan_in = C.
    bound = 1.0 / (C ** 0.5)
    w_mean = jax.random.uniform(kwm, (C, C), jnp.float32, -bound, bound)
    w_std = jax.random.uniform(kws, (C, C), jnp.float32, -bound, bound)

    # Reference first: x's buffer is donated to the kernel call below.
    ref = jax.block_until_ready(_cupi_reference(x, w_mean, w_std))
    x_shape, x_dtype = x.shape, x.dtype

    fwd = jax.jit(cupi_forward, static_argnames=("training",), donate_argnums=(0,))
    out = jax.block_until_ready(fwd(x, w_mean, w_std, training=True))

    assert out.shape == x_shape and out.dtype == x_dtype
    assert jnp.allclose(out, ref, atol=1e-4, rtol=1e-4)

    print("KERNEL_OK")
</pallas_src>

<mosaic_0001>
module attributes {stable_mosaic.version = 11 : i64} {
  func.func @kernel(%arg0: i32, %arg1: memref<2x1x8x256xf32, #tpu.memory_space<vmem>>, %arg2: memref<8x8xf32, #tpu.memory_space<vmem>>, %arg3: memref<8x8xf32, #tpu.memory_space<vmem>>, %arg4: memref<1x1x8x256xf32, #tpu.memory_space<vmem>>) attributes {dimension_semantics = [#tpu.dimension_semantics<parallel>], iteration_bounds = array<i64: 2>, scalar_prefetch = 0 : i64, scratch_operands = 0 : i64, tpu.core_type = #tpu.core_type<tc>, window_params = [{transform_indices = @transform_0, window_bounds = array<i64: 2, 1, 8, 256>}, {pipeline_mode = #tpu.pipeline_mode<synchronous>, transform_indices = @transform_1, window_bounds = array<i64: 8, 8>}, {pipeline_mode = #tpu.pipeline_mode<synchronous>, transform_indices = @transform_2, window_bounds = array<i64: 8, 8>}, {transform_indices = @transform_3, window_bounds = array<i64: 1, 1, 8, 256>}]} {
    %c0 = arith.constant 0 : index
    %c0_0 = arith.constant 0 : index
    %c0_1 = arith.constant 0 : index
    %c0_2 = arith.constant 0 : index
    %0 = vector.load %arg1[%c0, %c0_0, %c0_1, %c0_2] : memref<2x1x8x256xf32, #tpu.memory_space<vmem>>, vector<1x1x8x256xf32>
    %1 = vector.shape_cast %0 : vector<1x1x8x256xf32> to vector<1x8x256xf32>
    %cst = arith.constant dense<0.000000e+00> : vector<1x8xf32>
    %2 = vector.multi_reduction <add>, %1, %cst [2] : vector<1x8x256xf32> to vector<1x8xf32>
    %cst_3 = arith.constant 3.906250e-03 : f32
    %3 = vector.broadcast %cst_3 : f32 to vector<1x8xf32>
    %4 = arith.mulf %2, %3 : vector<1x8xf32>
    %5 = vector.shape_cast %4 : vector<1x8xf32> to vector<1x8x1xf32>
    %6 = vector.broadcast %5 : vector<1x8x1xf32> to vector<1x8x256xf32>
    %7 = arith.subf %1, %6 : vector<1x8x256xf32>
    %8 = arith.mulf %7, %7 : vector<1x8x256xf32>
    %cst_4 = arith.constant dense<0.000000e+00> : vector<1x8xf32>
    %9 = vector.multi_reduction <add>, %8, %cst_4 [2] : vector<1x8x256xf32> to vector<1x8xf32>
    %cst_5 = arith.constant 0.00392156886 : f32
    %10 = vector.broadcast %cst_5 : f32 to vector<1x8xf32>
    %11 = arith.mulf %9, %10 : vector<1x8xf32>
    %cst_6 = arith.constant 9.99999974E-6 : f32
    %12 = vector.broadcast %cst_6 : f32 to vector<1x8xf32>
    %13 = arith.addf %11, %12 : vector<1x8xf32>
    %14 = math.sqrt %13 : vector<1x8xf32>
    %c1 = arith.constant 1 : index
    %c0_7 = arith.constant 0 : index
    %c0_8 = arith.constant 0 : index
    %c0_9 = arith.constant 0 : index
    %15 = vector.load %arg1[%c1, %c0_7, %c0_8, %c0_9] : memref<2x1x8x256xf32, #tpu.memory_space<vmem>>, vector<1x1x8x256xf32>
    %16 = vector.shape_cast %15 : vector<1x1x8x256xf32> to vector<1x8x256xf32>
    %cst_10 = arith.constant dense<0.000000e+00> : vector<1x8xf32>
    %17 = vector.multi_reduction <add>, %16, %cst_10 [2] : vector<1x8x256xf32> to vector<1x8xf32>
    %cst_11 = arith.constant 3.906250e-03 : f32
    %18 = vector.broadcast %cst_11 : f32 to vector<1x8xf32>
    %19 = arith.mulf %17, %18 : vector<1x8xf32>
    %20 = vector.shape_cast %19 : vector<1x8xf32> to vector<1x8x1xf32>
    %21 = vector.broadcast %20 : vector<1x8x1xf32> to vector<1x8x256xf32>
    %22 = arith.subf %16, %21 : vector<1x8x256xf32>
    %23 = arith.mulf %22, %22 : vector<1x8x256xf32>
    %cst_12 = arith.constant dense<0.000000e+00> : vector<1x8xf32>
    %24 = vector.multi_reduction <add>, %23, %cst_12 [2] : vector<1x8x256xf32> to vector<1x8xf32>
    %cst_13 = arith.constant 0.00392156886 : f32
    %25 = vector.broadcast %cst_13 : f32 to vector<1x8xf32>
    %26 = arith.mulf %24, %25 : vector<1x8xf32>
    %cst_14 = arith.constant 9.99999974E-6 : f32
    %27 = vector.broadcast %cst_14 : f32 to vector<1x8xf32>
    %28 = arith.addf %26, %27 : vector<1x8xf32>
    %29 = math.sqrt %28 : vector<1x8xf32>
    %c0_15 = arith.constant 0 : index
    %c0_16 = arith.constant 0 : index
    %30 = vector.load %arg2[%c0_15, %c0_16] : memref<8x8xf32, #tpu.memory_space<vmem>>, vector<8x8xf32>
    %c0_17 = arith.constant 0 : index
    %c0_18 = arith.constant 0 : index
    %31 = vector.load %arg3[%c0_17, %c0_18] : memref<8x8xf32, #tpu.memory_space<vmem>>, vector<8x8xf32>
    %32 = vector.shape_cast %4 : vector<1x8xf32> to vector<1x8x1xf32>
    %33 = vector.shape_cast %30 : vector<8x8xf32> to vector<1x8x8xf32>
    %34 = vector.broadcast %32 : vector<1x8x1xf32> to vector<1x8x8xf32>
    %35 = arith.mulf %34, %33 : vector<1x8x8xf32>
    %cst_19 = arith.constant dense<0.000000e+00> : vector<1x8xf32>
    %36 = vector.multi_reduction <add>, %35, %cst_19 [1] : vector<1x8x8xf32> to vector<1x8xf32>
    %37 = vector.shape_cast %14 : vector<1x8xf32> to vector<1x8x1xf32>
    %38 = vector.shape_cast %31 : vector<8x8xf32> to vector<1x8x8xf32>
    %39 = vector.broadcast %37 : vector<1x8x1xf32> to vector<1x8x8xf32>
    %40 = arith.mulf %39, %38 : vector<1x8x8xf32>
    %cst_20 = arith.constant dense<0.000000e+00> : vector<1x8xf32>
    %41 = vector.multi_reduction <add>, %40, %cst_20 [1] : vector<1x8x8xf32> to vector<1x8xf32>
    %42 = arith.negf %36 : vector<1x8xf32>
    %43 = math.exp %42 : vector<1x8xf32>
    %cst_21 = arith.constant 1.000000e+00 : f32
    %44 = vector.broadcast %cst_21 : f32 to vector<1x8xf32>
    %45 = arith.addf %44, %43 : vector<1x8xf32>
    %46 = arith.divf %44, %45 : vector<1x8xf32>
    %47 = arith.negf %41 : vector<1x8xf32>
    %48 = math.exp %47 : vector<1x8xf32>
    %cst_22 = arith.constant 1.000000e+00 : f32
    %49 = vector.broadcast %cst_22 : f32 to vector<1x8xf32>
    %50 = arith.addf %49, %48 : vector<1x8xf32>
    %51 = arith.divf %49, %50 : vector<1x8xf32>
    %cst_23 = arith.constant 9.99999997E-7 : f32
    %52 = vector.broadcast %cst_23 : f32 to vector<1x8xf32>
    %53 = arith.addf %29, %52 : vector<1x8xf32>
    %54 = arith.divf %51, %53 : vector<1x8xf32>
    %55 = arith.mulf %19, %54 : vector<1x8xf32>
    %56 = arith.subf %46, %55 : vector<1x8xf32>
    %57 = vector.shape_cast %54 : vector<1x8xf32> to vector<1x8x1xf32>
    %58 = vector.broadcast %57 : vector<1x8x1xf32> to vector<1x8x256xf32>
    %59 = arith.mulf %16, %58 : vector<1x8x256xf32>
    %60 = vector.shape_cast %56 : vector<1x8xf32> to vector<1x8x1xf32>
    %61 = vector.broadcast %60 : vector<1x8x1xf32> to vector<1x8x256xf32>
    %62 = arith.addf %59, %61 : vector<1x8x256xf32>
    %c0_24 = arith.constant 0 : index
    %c0_25 = arith.constant 0 : index
    %c0_26 = arith.constant 0 : index
    %c0_27 = arith.constant 0 : index
    %63 = vector.load %arg4[%c0_24, %c0_25, %c0_26, %c0_27] : memref<1x1x8x256xf32, #tpu.memory_space<vmem>>, vector<1x1x8x256xf32>
    %64 = vector.shape_cast %63 : vector<1x1x8x256xf32> to vector<1x8x256xf32>
    %65 = vector.shape_cast %62 : vector<1x8x256xf32> to vector<1x1x8x256xf32>
    tpu.vector_store %arg4[%c0_24, %c0_25, %c0_26, %c0_27], %65 {strides = array<i32>} : memref<1x1x8x256xf32, #tpu.memory_space<vmem>>, vector<1x1x8x256xf32>,
    return
  }
  func.func @transform_0(%arg0: i32) -> (i32, i32, i32, i32) {
    %c0_i32 = arith.constant 0 : i32
    %c0_i32_0 = arith.constant 0 : i32
    %c0_i32_1 = arith.constant 0 : i32
    %c0_i32_2 = arith.constant 0 : i32
    return %c0_i32, %arg0, %c0_i32_0, %c0_i32_1 : i32, i32, i32, i32
  }
  func.func @transform_1(%arg0: i32) -> (i32, i32) {
    %c0_i32 = arith.constant 0 : i32
    %c0_i32_0 = arith.constant 0 : i32
    %c0_i32_1 = arith.constant 0 : i32
    return %c0_i32, %c0_i32_0 : i32, i32
  }
  func.func @transform_2(%arg0: i32) -> (i32, i32) {
    %c0_i32 = arith.constant 0 : i32
    %c0_i32_0 = arith.constant 0 : i32
    %c0_i32_1 = arith.constant 0 : i32
    return %c0_i32, %c0_i32_0 : i32, i32
  }
  func.func @transform_3(%arg0: i32) -> (i32, i32, i32, i32) {
    %c1_i32 = arith.constant 1 : i32
    %c0_i32 = arith.constant 0 : i32
    %c0_i32_0 = arith.constant 0 : i32
    %c0_i32_1 = arith.constant 0 : i32
    return %c1_i32, %arg0, %c0_i32, %c0_i32_0 : i32, i32, i32, i32
  }
}

</mosaic_0001>

<bundles_post_ra>
// kernel: cupi_forward.1
= control target key start
LH: loop header
LB: loop body
LE: loop exit
PB: predicated region body
PF: predicated region fallthrough
CT: control target
= control target key end

     0   :  { %s504_s12 = smov 0   ;;  %s506_s13 = smov 0   ;;  %s586_s0 = inlined_call_operand.vmem [shape: f32[3,2,8,256], index: 0, kind: input, shape index: {}, may-alias: {0,3}]   ;;  %s587_s1 = inlined_call_operand.vmem [shape: f32[8,8], index: 1, kind: input, shape index: {}]   ;;  %s588_s2 = inlined_call_operand.vmem [shape: f32[8,8], index: 2, kind: input, shape index: {}]   ;;  %s589_s3 = inlined_call_operand.vmem [shape: f32[3,2,8,256], index: 3, kind: output, shape index: {}, may-alias: {0,3}]  }
   0x1   :  { %s508_s14 = smov 0  }
   0x2 LB: > { %s397_s15 = sadd.s32 4294967295, %s481_s14   ;;  %s521_s16 = sadd.s32 1, %s481_s14   ;;  %s481_s14 = sphi %s508_s14, %s592_s14   ;;  %s477_s13 = sphi %s506_s13, %s591_s13   ;;  %s473_s12 = sphi %s504_s12, %s590_s12  }
   0x3   : > { %s17_s17 = ssub.s32 %s481_s14, %s521_s16  ;;  %s20_s18 = sadd.s32 1, %s477_s13 }
   0x4   : > { %p18_p0 = scmp.eq.s32.totalorder %s17_s17, 0  ;;  %p27_p1 = scmp.ne.s32.totalorder %s477_s13, %s473_s12 }
   0x5   : > { %p28_p2 = scmp.eq.s32.totalorder %s481_s14, 0  ;;  %p400_p4 = scmp.ge.s32.totalorder %s481_s14, 2 }
   0x6   : > { %s530_s19 = scalar_select %p18_p0, %s477_s13, %s20_s18  }
   0x7   : > { %p29_p3 = por %p28_p2, %p27_p1  ;;  %127 = sbr.rel (%p400_p4) target bundleno = 21 (0x15), region = 24 }
   0xe   : > { %130 = sbr.rel (!%p29_p3) target bundleno = 21 (0x15), region = 28  ;;  %s132_s20 = sand.u32 (%p29_p3), 1, %s477_s13  }
   0xf   : > { %s416_s21 = sshll.u32 (%p29_p3), %s481_s14, 4  ;;  %s401_s22 = sshll.u32 (%p29_p3), %s132_s20, 5 }
  0x10   : > { %s137_s25 = scalar_lea.vmem (%p29_p3), %s586_s0, %s416_s21  ;;  %s134_s26 = scalar_lea.vmem (%p29_p3), [#allocation2], %s401_s22 }
  0x11   : > { %v150_v0 = vld [vmem:[%s137_s25] sm:$0xff] (%p29_p3)  ;;  %v152_v1 = vld [vmem:[%s137_s25 + $0x8] sm:$0xff] (%p29_p3) }
  0x12   : > { %v154_v2 = vld [vmem:[%s137_s25 + $0x20] sm:$0xff] (%p29_p3)  ;;  %151 = vst [vmem:[%s134_s26] sm:$0xff] (%p29_p3), %v150_v0  ;;  %153 = vst [vmem:[%s134_s26 + $0x8] sm:$0xff] (%p29_p3), %v152_v1  ;;  %v156_v3 = vld [vmem:[%s137_s25 + $0x28] sm:$0xff] (%p29_p3) }
  0x13   : > { %155 = vst [vmem:[%s134_s26 + $0x10] sm:$0xff] (%p29_p3), %v154_v2  ;;  %157 = vst [vmem:[%s134_s26 + $0x18] sm:$0xff] (%p29_p3), %v156_v3 }
  0x15 PF: > { %p404_p5 = scmp.ge.s32.totalorder %s481_s14, 1  ;;  %p162_p6 = scmp.lt.s32.totalorder %s481_s14, 3 }
  0x17   : > { %p163_p7 = pnand %p404_p5, %p162_p6 }
  0x18   : > { %s169_s27 = sand.u32 (!%p163_p7), 1, %s473_s12   ;;  %v245_v32 = vld [vmem:[%s588_s2] sm:$0xff] (!%p163_p7)  ;;  %vm247_vm2 = vcmask (!%p163_p7), 64512   ;;  %v277_v46 = vlaneseq (!%p163_p7)  ;;  %v483_v58 = vmov (!%p163_p7), 0   ;;  %p193_p8 = scmp.lt.s32.totalorder (!%p163_p7), %s397_s15, 1 }
  0x19   : > { %166 = sbr.rel (%p163_p7) target bundleno = 755 (0x2f3), region = 51  ;;  %s405_s28 = sshll.u32 (!%p163_p7), %s169_s27, 5  ;;  %443 = vset.pattern.permute.xlu1 (!%p163_p7), %v483_v58  ;;  %444 = vset.pattern.permute.xlu0 (!%p163_p7), %v483_v58  ;;  %v244_v2 = vld [vmem:[%s587_s1] sm:$0xff] (!%p163_p7) }
  0x1a   : > { %s171_s29 = scalar_lea.vmem (!%p163_p7), [#allocation2], %s405_s28  ;;  %v278_v50 = vand.u32 (!%p163_p7), 127, %v277_v46  ;;  %v280_v51 = vshrl.u32 (!%p163_p7), %v277_v46, 7 }
  0x1b   : > { %v199_v4 = vld [vmem:[%s171_s29] sm:$0xff] (!%p163_p7)  ;;  %v200_v5 = vld [vmem:[%s171_s29 + $0x8] sm:$0xff] (!%p163_p7)  ;;  %v541_v6 = vld [vmem:[%s171_s29 + $0x10] sm:$0xff] (!%p163_p7) }
  0x1c   : > { %v201_v7 = vadd.f32 (!%p163_p7), %v200_v5, %v199_v4  ;;  %v543_v8 = vld [vmem:[%s171_s29 + $0x18] sm:$0xff] (!%p163_p7)  ;;  %v281_v54 = vsub.s32 (!%p163_p7), %v278_v50, %v280_v51  ;;  %v289_v60 = vsub.s32 (!%p163_p7), 0, %v280_v51 }
  0x1d   : > { %v224_v9 = vadd.f32 (!%p163_p7), %v543_v8, %v541_v6 }
  0x1e   : > { %202 = vadd.xlane.f32.xlu0 (!%p163_p7), %v201_v7 }
  0x20   : > { %s594_s15 = smov (!%p193_p8, %s397_s15), 1 }
  0x21   : > { %s417_s7 = sshll.u32 %s594_s15, 4 }
  0x22   : > { %225 = vadd.xlane.f32.xlu0 %v224_v9  ;;  %s363_s10 = scalar_lea.vmem %s589_s3, %s417_s7 }
  0xab   : > { %v203_v10 = vpop.xlane.xlu0 %202 }
  0xac   : > { %v547_v11 = vmul.f32 0.00390625, %v203_v10 }
  0xae   : > { %v205_v12 = vsub.f32 %v199_v4, %v547_v11  ;;  %v206_v13 = vsub.f32 %v200_v5, %v547_v11  ;;  %v246_v3 = vmul.f32 %v244_v2, %v547_v11 }
  0xaf   : > { %v226_v14 = vpop.xlane.xlu0 %225 }
  0xb0   : > { %v207_v15 = vmul.f32 %v205_v12, %v205_v12  ;;  %v208_v16 = vmul.f32 %v206_v13, %v206_v13  ;;  %v551_v17 = vmul.f32 0.00390625, %v226_v14  ;;  %v248_v4 = vsel %vm247_vm2, %v246_v3, 0.0 }
  0xb1   : > { %v249_v5 = vrot.slane %v248_v4, 4 }
  0xb2   : > { %v209_v18 = vadd.f32 %v208_v16, %v207_v15  ;;  %v228_v19 = vsub.f32 %v541_v6, %v551_v17  ;;  %v229_v20 = vsub.f32 %v543_v8, %v551_v17 }
  0xb3   : > { %v250_v7 = vadd.f32 %v249_v5, %v248_v4 }
  0xb4   : > { %210 = vadd.xlane.f32.xlu1 %v209_v18  ;;  %v230_v21 = vmul.f32 %v228_v19, %v228_v19  ;;  %v231_v22 = vmul.f32 %v229_v20, %v229_v20 }
  0xb5   : > { %v251_v9 = vrot.slane %v250_v7, 2 }
  0xb6   : > { %v232_v23 = vadd.f32 %v231_v22, %v230_v21 }
  0xb7   : > { %v252_v10 = vadd.f32 %v251_v9, %v250_v7 }
  0xb8   : > { %233 = vadd.xlane.f32.xlu1 %v232_v23 }
  0xb9   : > { %v253_v12 = vrot.slane %v252_v10, 1 }
  0xbb   : > { %v254_v13 = vadd.f32 %v253_v12, %v252_v10 }
  0xbd   : > { %v410_v14 = vmul.f32 -1.442695, %v254_v13 }
 0x141   : > { %v211_v24 = vpop.xlane.xlu1 %210 }
 0x142   : > { %v212_v25 = vmul.f32 0.003921569, %v211_v24 }
 0x144   : > { %v213_v26 = vadd.f32 1e-05, %v212_v25 }
 0x145   : > { %v234_v27 = vpop.xlane.xlu1 %233 }
 0x146   : > { %445 = vrsqrt.f32 %v213_v26  ;;  %v235_v28 = vmul.f32 0.003921569, %v234_v27  ;;  %vm216_vm0 = vcmp.eq.f32.partialorder %v213_v26, inf  ;;  %v219_v33 = vand.u32 2147483648, %v213_v26 }
 0x147   : > { %vm218_vm1 = vcmp.eq.f32.partialorder %v213_v26, 0.0 }
 0x148   : > { %v236_v29 = vadd.f32 1e-05, %v235_v28 }
 0x14a   : > { %447 = vrsqrt.f32 %v236_v29  ;;  %vm239_vm3 = vcmp.eq.f32.partialorder %v236_v29, inf  ;;  %v242_v47 = vand.u32 2147483648, %v236_v29  ;;  %vm241_vm4 = vcmp.eq.f32.partialorder %v236_v29, 0.0 }
 0x150   : > { %v446_v30 = vpop.eup %445 }
 0x151   : > { %v215_v31 = vmul.f32 %v446_v30, %v213_v26 }
 0x153   : > { %v217_v34 = vsel %vm216_vm0, %v213_v26, %v215_v31 }
 0x154   : > { %v220_v35 = vsel %vm218_vm1, %v219_v33, %v217_v34  ;;  %v448_v41 = vpop.eup %447 }
 0x155   : > { %v255_v36 = vmul.f32 %v245_v32, %v220_v35  ;;  %v238_v43 = vmul.f32 %v448_v41, %v236_v29 }
 0x157   : > { %v256_v37 = vsel %vm247_vm2, %v255_v36, 0.0  ;;  %v240_v48 = vsel %vm239_vm3, %v236_v29, %v238_v43 }
 0x158   : > { %v257_v38 = vrot.slane %v256_v37, 4  ;;  %v243_v52 = vsel %vm241_vm4, %v242_v47, %v240_v48 }
 0x159   : > { %v275_v53 = vadd.f32 1e-06, %v243_v52 }
 0x15a   : > { %v258_v39 = vadd.f32 %v257_v38, %v256_v37 }
 0x15b   : > { %v282_v55 = vrot.slane %v275_v53, %v281_v54 }
 0x15c   : > { %v259_v40 = vrot.slane %v258_v39, 2 }
 0x15e   : > { %v260_v42 = vadd.f32 %v259_v40, %v258_v39 }
 0x160   : > { %v261_v44 = vrot.slane %v260_v42, 1 }
 0x162   : > { %v262_v45 = vadd.f32 %v261_v44, %v260_v42 }
 0x164   : > { %v411_v49 = vmul.f32 -1.442695, %v262_v45 }
 0x166   : > { %449 = vpow2.f32 %v411_v49 }
 0x167   : > { %451 = vrcp.f32 %v282_v55 }
 0x170   : > { %v450_v56 = vpop.eup %449 }
 0x171   : > { %v272_v57 = vadd.f32 1.0, %v450_v56  ;;  %v452_v59 = vpop.eup %451 }
 0x173   : > { %453 = vrcp.f32 %v272_v57 }
 0x174   : > { %455 = vpow2.f32 %v410_v14 }
 0x17d   : > { %v454_v61 = vpop.eup %453 }
 0x17e   : > { %v285_v62 = vmul.f32 %v454_v61, %v452_v59  ;;  %v456_v15 = vpop.eup %455 }
 0x17f   : > { %v266_v16 = vadd.f32 1.0, %v456_v15 }
 0x180   : > { %v290_v63 = vrot.slane %v285_v62, %v289_v60 }
 0x181   : > { %457 = vrcp.f32 %v266_v16 }
 0x182   : > { %292 = vbcast.lane.b32.xlu0 %v290_v63, 256 }
 0x18b   : > { %v458_v19 = vpop.eup %457 }
 0x1f4   : > { %v293_v0 = vpop.permute.xlu0 %292 }
 0x1f5   : > { %v295_v1 = vmul.f32 %v293_v0, %v551_v17 }
 0x1f7   : > { %298 = vperm.xlu1 %443, %v295_v1  }
 0x1fb   : > { %311 = vbcast.lane.b32.xlu1 %v290_v63, 256 }
 0x276   : > { %v299_v17 = vpop.permute.xlu1 %298 }
 0x277   : > { %v303_v18 = vrot.slane %v299_v17, %v281_v54 }
 0x279   : > { %v305_v20 = vsub.f32 %v458_v19, %v303_v18 }
 0x27a   : > { %v312_v21 = vpop.permute.xlu1 %311 }
 0x27b   : > { %v318_v11 = vrot.slane %v305_v20, %v289_v60  ;;  %v313_v22 = vmul.f32 %v541_v6, %v312_v21  ;;  %v314_v23 = vmul.f32 %v543_v8, %v312_v21 }
 0x27d   : > { %320 = vbcast.lane.b32.xlu1 %v318_v11, 256 }
 0x2ef   : > { %v321_v24 = vpop.permute.xlu1 %320 }
 0x2f0   : > { %v322_v25 = vadd.f32 %v321_v24, %v313_v22  ;;  %v323_v26 = vadd.f32 %v321_v24, %v314_v23 }
 0x2f2   : > { %412 = vst [vmem:[%s363_s10 + $0x20] sm:$0xff] %v322_v25  ;;  %413 = vst [vmem:[%s363_s10 + $0x28] sm:$0xff] %v323_v26 }
 0x2f3 PF: > { %p10_p9 = scmp.ge.s32.totalorder %s521_s16, 4   ;;  %s590_s12 = smov %s477_s13 }
 0x2f4   : > { %s591_s13 = smov %s530_s19  ;;  %s592_s14 = smov %s521_s16 }
 0x2f5   :  { %12 = sbr.rel (!%p10_p9) target bundleno = 2 (0x2), region = 91 }

</bundles_post_ra>
